<compile_context>
chip_gen: v5e
topology: v5e:2x2
jax: 0.10.0
libtpu: 0.0.40
codegen_flags: <defaults>
</compile_context>

<pallas_src>
import math

import jax
import jax.numpy as jnp
from jax.experimental import pallas as pl
from jax.experimental.pallas import tpu as pltpu

_LANE = 128


def _build_pe_table(max_len: int, d_model: int) -> jnp.ndarray:
    """Sinusoidal table, shape (1, max_len, d_model), float32 (module buffer)."""
    assert d_model % 2 == 0, "PositionalEncoding requires an even d_model"
    position = jnp.arange(0, max_len, dtype=jnp.float32)[:, None]            # (L, 1)
    div_term = jnp.exp(
        jnp.arange(0, d_model, 2, dtype=jnp.float32) * (-math.log(10000.0) / d_model)
    )                                                                          # (D/2,)
    angles = position * div_term                                               # (L, D/2)
    # interleave: pe[:, 0::2] = sin, pe[:, 1::2] = cos
    pe = jnp.stack([jnp.sin(angles), jnp.cos(angles)], axis=-1).reshape(max_len, d_model)
    return pe[None, :, :]                                                      # (1, L, D)


def _sublane_granule(itemsize: int) -> int:
    """Rows per vreg for this dtype: 8 (f32), 16 (bf16/fp16), 32 (int8/fp8)."""
    return max(8, 32 // max(1, itemsize))


def _block_budget_bytes() -> int:
    """Per-block byte budget, generation-aware (smaller physical VMEM on v7x)."""
    try:
        vmem_bytes = int(pltpu.get_tpu_info().vmem_capacity_bytes)
    except Exception:
        vmem_bytes = 128 << 20
    # 4 working blocks (double-buffered in + out) + resident PE must stay far
    # below physical VMEM; ~1/16 of capacity per block, capped at 4 MiB.
    return int(min(4 << 20, max(1 << 20, vmem_bytes // 16)))


def _pick_tiles(num_rows: int, num_cols: int, itemsize: int):
    """(8/16/32, 128)-friendly block shape, always clamped to the byte budget."""
    budget = _block_budget_bytes()
    granule = _sublane_granule(itemsize)
    # Column tile: the whole flattened row if a granule-row block of it fits the
    # budget, else the largest 128-multiple that does (partial last block OK).
    max_cols = max(_LANE, (budget // (granule * itemsize)) // _LANE * _LANE)
    tc = num_cols if num_cols <= max_cols else max_cols
    # Row tile: the whole batch dim if it fits, else the largest granule
    # multiple within budget (partial last block OK).
    max_rows = max(granule, (budget // (tc * itemsize)) // granule * granule)
    tr = num_rows if num_rows <= max_rows else max_rows
    return tr, tc


def _pe_add_kernel(x_ref, pe_ref, o_ref):
    # x_ref/o_ref: (tr, tc); pe_ref: (1, tc) broadcast over the row (batch) dim.
    o_ref[...] = x_ref[...] + pe_ref[...]


def positional_encoding_forward(x: jnp.ndarray, pe_table: jnp.ndarray) -> jnp.ndarray:
    """x: (B, S, D); pe_table: (1, max_len, D). Returns x + pe[:, :S]."""
    B, S, D = x.shape
    assert pe_table.shape[-1] == D, "d_model mismatch between x and pe table"
    assert S <= pe_table.shape[1], "sequence length exceeds positional_encoding max_len"
    C = S * D

    # Lane-dense flatten; cast PE to the activation dtype outside the kernel.
    x_flat = x.reshape(B, C)
    pe_flat = pe_table[0, :S, :].astype(x.dtype).reshape(1, C)

    itemsize = jnp.dtype(x.dtype).itemsize
    tr, tc = _pick_tiles(B, C, itemsize)
    ni = pl.cdiv(B, tr)
    nj = pl.cdiv(C, tc)

    if nj == 1:
        # Whole PE row resident and single-buffered: constant block index.
        pe_spec = pl.BlockSpec((1, tc), lambda j, i: (0, 0),
                               pipeline_mode=pl.Buffered(1))
    else:
        # Column axis is the OUTER grid dim, so this index is constant across
        # all inner (row) steps -> the PE DMA is elided between them.
        pe_spec = pl.BlockSpec((1, tc), lambda j, i: (0, j))

    # Explicit scoped-VMEM limit so the larger tiles also compile on v5e's
    # 16 MiB default while staying far under v7x's 64 MiB physical VMEM.
    block_bytes = tr * tc * itemsize
    pe_bytes = (C if nj == 1 else 2 * tc) * itemsize
    vmem_needed = 4 * block_bytes + pe_bytes
    vmem_limit = int(min(48 << 20, max(32 << 20, 2 * vmem_needed)))

    out_flat = pl.pallas_call(
        _pe_add_kernel,
        out_shape=jax.ShapeDtypeStruct((B, C), x.dtype),
        grid_spec=pltpu.PrefetchScalarGridSpec(
            num_scalar_prefetch=0,
            grid=(nj, ni),                                     # col OUTER, row INNER
            in_specs=[
                pl.BlockSpec((tr, tc), lambda j, i: (i, j)),   # x tile
                pe_spec,                                        # shared PE row
            ],
            out_specs=pl.BlockSpec((tr, tc), lambda j, i: (i, j)),
        ),
        input_output_aliases={0: 0},   # donate x's buffer to the output
        cost_estimate=pl.CostEstimate(
            flops=B * C,
            transcendentals=0,
            bytes_accessed=(2 * B * C + C) * itemsize,
        ),
        compiler_params=pltpu.CompilerParams(
            dimension_semantics=("parallel", "parallel"),
            vmem_limit_bytes=vmem_limit,
        ),
    )(x_flat, pe_flat)

    return out_flat.reshape(B, S, D)


if __name__ == "__main__":
    # cfg equivalent: d_model=32, positional_encoding.max_len=64
    d_model = 32
    max_len = 64
    batch = 2
    seq = 8

    pe_table = _build_pe_table(max_len, d_model)  # module buffer from __init__

    key = jax.random.PRNGKey(0)
    x = jax.random.normal(key, (batch, seq, d_model), dtype=jnp.float32)

    out = positional_encoding_forward(x, pe_table)
    out = jax.block_until_ready(out)

    # sanity check against pure-JAX reference
    ref = x + pe_table[:, :seq]
    assert out.shape == (batch, seq, d_model)
    assert jnp.allclose(out, ref, atol=1e-6), "mismatch vs reference"

    print("KERNEL_OK")
</pallas_src>

<mosaic_0001>
module attributes {stable_mosaic.version = 11 : i64} {
  func.func @_pe_add_kernel(%arg0: i32, %arg1: i32, %arg2: memref<2x256xf32, #tpu.memory_space<vmem>>, %arg3: memref<1x256xf32, #tpu.memory_space<vmem>>, %arg4: memref<2x256xf32, #tpu.memory_space<vmem>>) attributes {dimension_semantics = [#tpu.dimension_semantics<parallel>, #tpu.dimension_semantics<parallel>], iteration_bounds = array<i64: 1, 1>, scalar_prefetch = 0 : i64, scratch_operands = 0 : i64, tpu.core_type = #tpu.core_type<tc>, window_params = [{transform_indices = @transform_0, window_bounds = array<i64: 2, 256>}, {pipeline_mode = #tpu.pipeline_mode<synchronous>, transform_indices = @transform_1, window_bounds = array<i64: 1, 256>}, {transform_indices = @transform_2, window_bounds = array<i64: 2, 256>}]} {
    %c0 = arith.constant 0 : index
    %c0_0 = arith.constant 0 : index
    %0 = vector.load %arg2[%c0, %c0_0] : memref<2x256xf32, #tpu.memory_space<vmem>>, vector<2x256xf32>
    %c0_1 = arith.constant 0 : index
    %c0_2 = arith.constant 0 : index
    %1 = vector.load %arg3[%c0_1, %c0_2] : memref<1x256xf32, #tpu.memory_space<vmem>>, vector<1x256xf32>
    %2 = vector.broadcast %1 : vector<1x256xf32> to vector<2x256xf32>
    %3 = arith.addf %0, %2 : vector<2x256xf32>
    %c0_3 = arith.constant 0 : index
    %c0_4 = arith.constant 0 : index
    %4 = vector.load %arg4[%c0_3, %c0_4] : memref<2x256xf32, #tpu.memory_space<vmem>>, vector<2x256xf32>
    tpu.vector_store %arg4[%c0_3, %c0_4], %3 {strides = array<i32>} : memref<2x256xf32, #tpu.memory_space<vmem>>, vector<2x256xf32>,
    return
  }
  func.func @transform_0(%arg0: i32, %arg1: i32) -> (i32, i32) {
    %c0_i32 = arith.constant 0 : i32
    return %arg1, %arg0 : i32, i32
  }
  func.func @transform_1(%arg0: i32, %arg1: i32) -> (i32, i32) {
    %c0_i32 = arith.constant 0 : i32
    %c0_i32_0 = arith.constant 0 : i32
    %c0_i32_1 = arith.constant 0 : i32
    return %c0_i32, %c0_i32_0 : i32, i32
  }
  func.func @transform_2(%arg0: i32, %arg1: i32) -> (i32, i32) {
    %c0_i32 = arith.constant 0 : i32
    return %arg1, %arg0 : i32, i32
  }
}

</mosaic_0001>

<bundles_post_ra>
// kernel: tpu_custom_call.1
= control target key start
LH: loop header
LB: loop body
LE: loop exit
PB: predicated region body
PF: predicated region fallthrough
CT: control target
= control target key end

     0   :  { %7 = vsyncpa [#allocation3], 0  ;;  %s134_s0 = inlined_call_operand.hbm [shape: f32[2,256], index: 0, kind: input, shape index: {}, may-alias: {0,2}]   ;;  %s135_s1 = inlined_call_operand.vmem [shape: f32[1,256], index: 1, kind: input, shape index: {}]   ;;  %s136_s2 = inlined_call_operand.hbm [shape: f32[2,256], index: 2, kind: output, shape index: {}, may-alias: {0,2}]  }
   0x1   :  { %8 = vsyncpa [#allocation4], 0  ;;  %s14_s11 = sshll.u32 %s134_s0, 4  ;;  %s108_s12 = smov [#allocation2]   ;;  %s15_s11 = int_to_ptr.hbm [resolvable:$true] %s14_s11 }
   0x2   :  { %s16_s13 = sshll.u32 %s108_s12, 4  ;;  %s17_s13 = int_to_ptr.vmem [resolvable:$true] %s16_s13 }
   0x3   :  { %19 = dma.hbm_to_vmem [thread:$0]  %s15_s11, 64, %s17_s13, [#allocation3]  }
   0x4   :  { %104 = dma.done.wait [#allocation3], 64  }
   0x5   :  { %105 = vsyncadd [#allocation3], 4294967232  ;;  %v27_v0 = vld [vmem:[%s135_s1] sm:$0x3]  ;;  %vm32_vm0 = vcmask 1041408   ;;  %s109_s16 = smov [#allocation5]  }
   0x6   :  { %v29_v1 = vperm.slane %v27_v0, 0  ;;  %v30_v2 = vperm.slane %v27_v0, 1  ;;  %v26_v3 = vld [vmem:[#allocation2] sm:$0xf]  ;;  %s42_s17 = sshll.u32 %s109_s16, 4  ;;  %s44_s19 = sshll.u32 %s136_s2, 4  ;;  %s43_s17 = int_to_ptr.vmem [resolvable:$true] %s42_s17  ;;  %s45_s19 = int_to_ptr.hbm [resolvable:$true] %s44_s19 }
   0x8   :  { %v31_v4 = vrot.slane %v30_v2, 6 }
   0xa   :  { %v33_v5 = vsel %vm32_vm0, %v29_v1, %v31_v4 }
   0xb   :  { %v35_v6 = vadd.f32 %v33_v5, %v26_v3 }
   0xd   :  { %36 = vst [vmem:[#allocation5] sm:$0xf] %v35_v6 }
   0xe   :  { %47 = dma.vmem_to_hbm [thread:$0]  %s43_s17, 64, %s45_s19, [#allocation4]  }
   0xf   :  { %106 = dma.done.wait [#allocation4], 64  }
  0x10   :  { %107 = vsyncadd [#allocation4], 4294967232 }
  0x11   :  { %52 = vsyncpa [#allocation3], 1 }
  0x12   :  { %53 = vsyncpa [#allocation4], 1 }

</bundles_post_ra>
